<compile_context>
chip_gen: v5e
topology: v5e:2x2
jax: 0.10.0
libtpu: 0.0.40
codegen_flags: <defaults>
</compile_context>

<pallas_src>
import functools

import numpy as np
import jax
import jax.numpy as jnp
from jax.experimental import pallas as pl
from jax.experimental.pallas import tpu as pltpu


def _round_up(x: int, m: int) -> int:
    return ((x + m - 1) // m) * m


def _center_loss_kernel(labels_ref, emb1_ref, emb2_ref, centers_ref, o_ref,
                        *, n_valid: int, tb: int, scale: float):
    step = pl.program_id(0)

    # Initialize the resident (1,1) accumulator on the first grid step.
    @pl.when(step == 0)
    def _():
        o_ref[...] = jnp.zeros_like(o_ref)

    labels = labels_ref[...]                          # (tb, 1) int32
    e1 = emb1_ref[...].astype(jnp.float32)            # (tb, D)
    e2 = emb2_ref[...].astype(jnp.float32)            # (tb, D)
    c0 = centers_ref[0:1, :].astype(jnp.float32)      # (1, D)
    c1 = centers_ref[1:2, :].astype(jnp.float32)      # (1, D)

    # centers[labels] with only 2 centers == a VPU select (no gather needed).
    sel = jnp.where(labels == 0, c0, c1)              # (tb, D)

    # Mask rows that are padding (batch was rounded up to a multiple of tb).
    row = jax.lax.broadcasted_iota(jnp.int32, (tb, 1), 0) + step * tb
    valid = row < n_valid                             # (tb, 1)

    d1 = jnp.where(valid, e1 - sel, 0.0)
    d2 = jnp.where(valid, e2 - sel, 0.0)

    # Full reduce (keepdims -> (1,1)), scale folded in (weight / B).
    partial = jnp.sum(d1 * d1 + d2 * d2, keepdims=True) * scale
    o_ref[...] += partial.astype(o_ref.dtype)


def center_loss(emb1, emb2, labels, centers, weight: float = 0.1,
                block_b: int = 256):
    """emb1, emb2: (B, D) float; labels: (B,) int in {0,1}; centers: (2, D).
    Returns the scalar center loss (float32)."""
    B, D = emb1.shape
    assert emb2.shape == (B, D)
    assert centers.shape[0] == 2 and centers.shape[1] == D

    # Batch tile: multiple of 8 (sublane), large enough to amortize per-step
    # overhead, capped by block_b (keep double-buffered blocks modest in VMEM).
    tb = min(_round_up(B, 8), _round_up(block_b, 8))
    b_pad = _round_up(B, tb)

    pad = b_pad - B
    if pad:
        emb1 = jnp.pad(emb1, ((0, pad), (0, 0)))
        emb2 = jnp.pad(emb2, ((0, pad), (0, 0)))
        labels = jnp.pad(labels, ((0, pad),))
    labels2d = labels.astype(jnp.int32).reshape(b_pad, 1)

    kernel = functools.partial(
        _center_loss_kernel,
        n_valid=B, tb=tb, scale=float(weight) / float(B))

    itemsize = int(np.dtype(emb1.dtype).itemsize)
    cost = pl.CostEstimate(
        flops=int(8 * B * D),                      # 2x (sub, mul, 2 adds) per elem
        transcendentals=0,
        bytes_accessed=int(2 * b_pad * D * itemsize + 2 * D * itemsize
                           + b_pad * 4 + 4),
    )

    out = pl.pallas_call(
        kernel,
        out_shape=jax.ShapeDtypeStruct((1, 1), jnp.float32),
        grid=(b_pad // tb,),
        in_specs=[
            pl.BlockSpec((tb, 1), lambda i: (i, 0)),      # labels tile
            pl.BlockSpec((tb, D), lambda i: (i, 0)),      # emb1 tile
            pl.BlockSpec((tb, D), lambda i: (i, 0)),      # emb2 tile
            pl.BlockSpec((2, D), lambda i: (0, 0)),       # centers, resident
        ],
        out_specs=pl.BlockSpec((1, 1), lambda i: (0, 0)), # accumulator
        compiler_params=pltpu.CompilerParams(
            dimension_semantics=("arbitrary",)),          # carried accumulation
        cost_estimate=cost,
    )(labels2d, emb1, emb2, centers)

    return out[0, 0]


def _ref_center_loss(emb1, emb2, labels, centers, weight=0.1):
    c = centers[labels]
    return weight * (jnp.sum((emb1 - c) ** 2) + jnp.sum((emb2 - c) ** 2)) / emb1.shape[0]


if __name__ == "__main__":
    key = jax.random.PRNGKey(0)
    k1, k2, k3, k4 = jax.random.split(key, 4)

    B, D = 8, 32                       # small shapes: batch=8, hidden=32
    weight = 0.1

    emb1 = jax.random.normal(k1, (B, D), dtype=jnp.float32)
    emb2 = jax.random.normal(k2, (B, D), dtype=jnp.float32)
    labels = jax.random.randint(k3, (B,), 0, 2, dtype=jnp.int32)
    # TODO(synk): torch lazily creates `centers` as an nn.Parameter on the first
    # forward; parameter state has no kernel equivalent, so it is initialized
    # host-side (randn-like) and passed in explicitly.
    centers = jax.random.normal(k4, (2, D), dtype=jnp.float32)

    loss = jax.block_until_ready(center_loss(emb1, emb2, labels, centers, weight))
    ref = _ref_center_loss(emb1, emb2, labels, centers, weight)
    np.testing.assert_allclose(np.asarray(loss), np.asarray(ref), rtol=1e-5, atol=1e-6)

    # Extra check with a batch that is not a multiple of 8 (exercises padding/mask).
    B2 = 6
    loss2 = jax.block_until_ready(
        center_loss(emb1[:B2], emb2[:B2], labels[:B2], centers, weight))
    ref2 = _ref_center_loss(emb1[:B2], emb2[:B2], labels[:B2], centers, weight)
    np.testing.assert_allclose(np.asarray(loss2), np.asarray(ref2), rtol=1e-5, atol=1e-6)

    print("KERNEL_OK")
</pallas_src>

<mosaic_0001>
module attributes {stable_mosaic.version = 11 : i64} {
  func.func @_center_loss_kernel(%arg0: i32, %arg1: memref<8x1xi32, #tpu.memory_space<vmem>>, %arg2: memref<8x32xf32, #tpu.memory_space<vmem>>, %arg3: memref<8x32xf32, #tpu.memory_space<vmem>>, %arg4: memref<2x32xf32, #tpu.memory_space<vmem>>, %arg5: memref<1x1xf32, #tpu.memory_space<vmem>>) attributes {dimension_semantics = [#tpu.dimension_semantics<arbitrary>], iteration_bounds = array<i64: 1>, scalar_prefetch = 0 : i64, scratch_operands = 0 : i64, tpu.core_type = #tpu.core_type<tc>, window_params = [{transform_indices = @transform_0, window_bounds = array<i64: 8, 1>}, {transform_indices = @transform_1, window_bounds = array<i64: 8, 32>}, {transform_indices = @transform_2, window_bounds = array<i64: 8, 32>}, {pipeline_mode = #tpu.pipeline_mode<synchronous>, transform_indices = @transform_3, window_bounds = array<i64: 2, 32>}, {pipeline_mode = #tpu.pipeline_mode<synchronous>, transform_indices = @transform_4, window_bounds = array<i64: 1, 1>}]} {
    %c0_i32 = arith.constant 0 : i32
    %0 = arith.cmpi eq, %arg0, %c0_i32 : i32
    %1 = arith.extui %0 : i1 to i32
    %c0_i32_0 = arith.constant 0 : i32
    %2 = arith.cmpi ne, %1, %c0_i32_0 : i32
    scf.if %2 {
      %cst_18 = arith.constant 0.000000e+00 : f32
      %46 = vector.broadcast %cst_18 : f32 to vector<1x1xf32>
      %c0_19 = arith.constant 0 : index
      %c0_20 = arith.constant 0 : index
      %47 = vector.load %arg5[%c0_19, %c0_20] : memref<1x1xf32, #tpu.memory_space<vmem>>, vector<1x1xf32>
      tpu.vector_store %arg5[%c0_19, %c0_20], %46 {strides = array<i32>} : memref<1x1xf32, #tpu.memory_space<vmem>>, vector<1x1xf32>,
    } else {
    }
    %c0 = arith.constant 0 : index
    %c0_1 = arith.constant 0 : index
    %3 = vector.load %arg1[%c0, %c0_1] : memref<8x1xi32, #tpu.memory_space<vmem>>, vector<8x1xi32>
    %c0_2 = arith.constant 0 : index
    %c0_3 = arith.constant 0 : index
    %4 = vector.load %arg2[%c0_2, %c0_3] : memref<8x32xf32, #tpu.memory_space<vmem>>, vector<8x32xf32>
    %c0_4 = arith.constant 0 : index
    %c0_5 = arith.constant 0 : index
    %5 = vector.load %arg3[%c0_4, %c0_5] : memref<8x32xf32, #tpu.memory_space<vmem>>, vector<8x32xf32>
    %c0_6 = arith.constant 0 : index
    %c0_7 = arith.constant 0 : index
    %6 = vector.load %arg4[%c0_6, %c0_7] : memref<2x32xf32, #tpu.memory_space<vmem>>, vector<1x32xf32>
    %c1 = arith.constant 1 : index
    %c0_8 = arith.constant 0 : index
    %7 = vector.load %arg4[%c1, %c0_8] : memref<2x32xf32, #tpu.memory_space<vmem>>, vector<1x32xf32>
    %c0_i32_9 = arith.constant 0 : i32
    %8 = vector.broadcast %c0_i32_9 : i32 to vector<8x1xi32>
    %9 = arith.cmpi eq, %3, %8 : vector<8x1xi32>
    %10 = vector.shape_cast %9 : vector<8x1xi1> to vector<8x1xi1>
    %11 = vector.broadcast %10 : vector<8x1xi1> to vector<8x32xi1>
    %12 = vector.shape_cast %6 : vector<1x32xf32> to vector<1x32xf32>
    %13 = vector.broadcast %12 : vector<1x32xf32> to vector<8x32xf32>
    %14 = vector.shape_cast %7 : vector<1x32xf32> to vector<1x32xf32>
    %15 = vector.broadcast %14 : vector<1x32xf32> to vector<8x32xf32>
    %16 = arith.select %11, %13, %15 : vector<8x32xi1>, vector<8x32xf32>
    %17 = tpu.iota {dimensions = array<i32: 0>} : vector<8x1xi32>
    %c8_i32 = arith.constant 8 : i32
    %18 = arith.muli %arg0, %c8_i32 : i32
    %19 = vector.broadcast %18 : i32 to vector<8x1xi32>
    %20 = arith.addi %17, %19 : vector<8x1xi32>
    %c8_i32_10 = arith.constant 8 : i32
    %21 = vector.broadcast %c8_i32_10 : i32 to vector<8x1xi32>
    %22 = arith.cmpi slt, %20, %21 : vector<8x1xi32>
    %23 = arith.subf %4, %16 : vector<8x32xf32>
    %cst = arith.constant 0.000000e+00 : f32
    %24 = vector.shape_cast %22 : vector<8x1xi1> to vector<8x1xi1>
    %25 = vector.broadcast %24 : vector<8x1xi1> to vector<8x32xi1>
    %26 = vector.broadcast %cst : f32 to vector<8x32xf32>
    %27 = arith.select %25, %23, %26 : vector<8x32xi1>, vector<8x32xf32>
    %28 = arith.subf %5, %16 : vector<8x32xf32>
    %cst_11 = arith.constant 0.000000e+00 : f32
    %29 = vector.shape_cast %22 : vector<8x1xi1> to vector<8x1xi1>
    %30 = vector.broadcast %29 : vector<8x1xi1> to vector<8x32xi1>
    %31 = vector.broadcast %cst_11 : f32 to vector<8x32xf32>
    %32 = arith.select %30, %28, %31 : vector<8x32xi1>, vector<8x32xf32>
    %33 = arith.mulf %27, %27 : vector<8x32xf32>
    %34 = arith.mulf %32, %32 : vector<8x32xf32>
    %35 = arith.addf %33, %34 : vector<8x32xf32>
    %36 = vector.shape_cast %35 : vector<8x32xf32> to vector<1x8x32xf32>
    %cst_12 = arith.constant dense<0.000000e+00> : vector<1xf32>
    %37 = vector.multi_reduction <add>, %36, %cst_12 [1, 2] : vector<1x8x32xf32> to vector<1xf32>
    %38 = vector.shape_cast %37 : vector<1xf32> to vector<1x1x1xf32>
    %39 = vector.extract %38[0, 0, 0] : f32 from vector<1x1x1xf32>
    %40 = vector.broadcast %39 : f32 to vector<1x1xf32>
    %cst_13 = arith.constant 1.250000e-02 : f32
    %41 = vector.broadcast %cst_13 : f32 to vector<1x1xf32>
    %42 = arith.mulf %40, %41 : vector<1x1xf32>
    %c0_14 = arith.constant 0 : index
    %c0_15 = arith.constant 0 : index
    %43 = vector.load %arg5[%c0_14, %c0_15] : memref<1x1xf32, #tpu.memory_space<vmem>>, vector<1x1xf32>
    %44 = arith.addf %43, %42 : vector<1x1xf32>
    %c0_16 = arith.constant 0 : index
    %c0_17 = arith.constant 0 : index
    %45 = vector.load %arg5[%c0_16, %c0_17] : memref<1x1xf32, #tpu.memory_space<vmem>>, vector<1x1xf32>
    tpu.vector_store %arg5[%c0_16, %c0_17], %44 {strides = array<i32>} : memref<1x1xf32, #tpu.memory_space<vmem>>, vector<1x1xf32>,
    return
  }
  func.func @transform_0(%arg0: i32) -> (i32, i32) {
    %c0_i32 = arith.constant 0 : i32
    %c0_i32_0 = arith.constant 0 : i32
    return %arg0, %c0_i32 : i32, i32
  }
  func.func @transform_1(%arg0: i32) -> (i32, i32) {
    %c0_i32 = arith.constant 0 : i32
    %c0_i32_0 = arith.constant 0 : i32
    return %arg0, %c0_i32 : i32, i32
  }
  func.func @transform_2(%arg0: i32) -> (i32, i32) {
    %c0_i32 = arith.constant 0 : i32
    %c0_i32_0 = arith.constant 0 : i32
    return %arg0, %c0_i32 : i32, i32
  }
  func.func @transform_3(%arg0: i32) -> (i32, i32) {
    %c0_i32 = arith.constant 0 : i32
    %c0_i32_0 = arith.constant 0 : i32
    %c0_i32_1 = arith.constant 0 : i32
    return %c0_i32, %c0_i32_0 : i32, i32
  }
  func.func @transform_4(%arg0: i32) -> (i32, i32) {
    %c0_i32 = arith.constant 0 : i32
    %c0_i32_0 = arith.constant 0 : i32
    %c0_i32_1 = arith.constant 0 : i32
    return %c0_i32, %c0_i32_0 : i32, i32
  }
}

</mosaic_0001>

<bundles_post_ra>
// kernel: tpu_custom_call.1
= control target key start
LH: loop header
LB: loop body
LE: loop exit
PB: predicated region body
PF: predicated region fallthrough
CT: control target
= control target key end

     0   :  { %9 = vsyncpa [#allocation3], 0  ;;  %s211_s0 = inlined_call_operand.vmem [shape: s32[8,1], index: 0, kind: input, shape index: {}]   ;;  %s212_s1 = inlined_call_operand.vmem [shape: f32[8,32], index: 1, kind: input, shape index: {}]   ;;  %s213_s2 = inlined_call_operand.hbm [shape: f32[8,32], index: 2, kind: input, shape index: {}]   ;;  %s214_s3 = inlined_call_operand.vmem [shape: f32[2,32], index: 3, kind: input, shape index: {}]   ;;  %s215_s4 = inlined_call_operand.hbm [shape: f32[1,1], index: 4, kind: output, shape index: {}]  }
   0x1   :  { %10 = vsyncpa [#allocation4], 0  ;;  %s20_s17 = sshll.u32 %s213_s2, 4  ;;  %s162_s18 = smov [#allocation2]   ;;  %s21_s17 = int_to_ptr.hbm [resolvable:$true] %s20_s17 }
   0x2   :  { %s22_s19 = sshll.u32 %s162_s18, 4  ;;  %s23_s19 = int_to_ptr.vmem [resolvable:$true] %s22_s19 }
   0x3   :  { %25 = dma.hbm_to_vmem [thread:$0]  %s21_s17, 128, %s23_s19, [#allocation3]  }
   0x4   :  { %158 = dma.done.wait [#allocation3], 128  }
   0x5   :  { %159 = vsyncadd [#allocation3], 4294967168  ;;  %vm36_vm0 = vcmask 0   ;;  %v163_v0 = vmov 0.0   ;;  %v164_v1 = vmov 0   ;;  %v38_v2 = vld [vmem:[%s211_s0] sm:$0xff] }
   0x6   :  { %37 = vst.msk [vmem:[#allocation5] sm:$0x1] %vm36_vm0, %v163_v0  ;;  %107 = vset.pattern.permute.xlu0 %v164_v1  ;;  %vm43_vm1 = vcmp.eq.s32.totalorder %v38_v2, 0  ;;  %v108_v4 = vld [vmem:[%s214_s3] ss:$0 sm:$0xff]  ;;  %vm67_vm3 = vcmask 261120  }
   0x7   :  { %v44_v3 = vsel %vm43_vm1, 1, %v164_v1  ;;  %v109_v5 = vld [vmem:[%s214_s3 + $0x1] ss:$0 sm:$0xff]  ;;  %s91_s29 = sshll.u32 %s215_s4, 4  ;;  %s92_s29 = int_to_ptr.hbm [resolvable:$true] %s91_s29 }
   0x8   :  { %46 = vperm.xlu0 %107, %v44_v3   ;;  %v39_v6 = vld [vmem:[%s212_s1] sm:$0xff]  ;;  %s165_s1 = smov [#allocation5]  }
   0x9   :  { %v40_v7 = vld [vmem:[#allocation2] sm:$0xff]  ;;  %s89_s3 = sshll.u32 %s165_s1, 4  ;;  %s90_s3 = int_to_ptr.vmem [resolvable:$true] %s89_s3 }
   0xd   :  { %v80_v24 = vld [vmem:[#allocation5] sm:$0x1] }
  0x7a   :  { %v47_v8 = vpop.permute.xlu0 %46 }
  0x7b   :  { %vm48_vm2 = vcmp.eq.s32.totalorder %v47_v8, 1 }
  0x7c   :  { %v51_v9 = vsel %vm48_vm2, %v108_v4, %v109_v5 }
  0x7d   :  { %v58_v10 = vsub.f32 %v39_v6, %v51_v9  ;;  %v62_v11 = vsub.f32 %v40_v7, %v51_v9 }
  0x7f   :  { %v64_v12 = vmul.f32 %v58_v10, %v58_v10  ;;  %v65_v13 = vmul.f32 %v62_v11, %v62_v11 }
  0x81   :  { %v66_v14 = vadd.f32 %v65_v13, %v64_v12 }
  0x83   :  { %v68_v15 = vsel %vm67_vm3, %v66_v14, 0.0 }
  0x84   :  { %69 = vadd.xlane.f32.xlu0 %v68_v15 }
  0xf7   :  { %v70_v16 = vpop.xlane.xlu0 %69 }
  0xf8   :  { %v71_v17 = vrot.slane %v70_v16, 4 }
  0xfa   :  { %v72_v18 = vadd.f32 %v71_v17, %v70_v16 }
  0xfc   :  { %v73_v19 = vrot.slane %v72_v18, 2 }
  0xfe   :  { %v74_v20 = vadd.f32 %v73_v19, %v72_v18 }
 0x100   :  { %v75_v21 = vrot.slane %v74_v20, 1 }
 0x102   :  { %v76_v22 = vadd.f32 %v75_v21, %v74_v20 }
 0x104   :  { %101 = vpush %v76_v22 }
 0x135   :  { %s102_s0 = spop %101 }
 0x136   :  { %v78_v23 = vstv %s102_s0 }
 0x137   :  { %v79_v25 = vmul.f32 0.0125, %v78_v23 }
 0x139   :  { %v81_v26 = vadd.f32 %v80_v24, %v79_v25 }
 0x13b   :  { %83 = vst.msk [vmem:[#allocation5] sm:$0x1] %vm36_vm0, %v81_v26 }
 0x13c   :  { %94 = dma.vmem_to_hbm [thread:$0]  %s90_s3, 16, %s92_s29, [#allocation4]  }
 0x13d   :  { %160 = dma.done.wait [#allocation4], 16  }
 0x13e   :  { %161 = vsyncadd [#allocation4], 4294967280 }
 0x13f   :  { %99 = vsyncpa [#allocation3], 1 }
 0x140   :  { %100 = vsyncpa [#allocation4], 1 }

</bundles_post_ra>
